<compile_context>
chip_gen: v7x
topology: tpu7x:2x2x1
jax: 0.10.0
libtpu: 0.0.40
codegen_flags: <defaults>
</compile_context>

<pallas_src>
import functools

import numpy as np
import jax
import jax.numpy as jnp
from jax.experimental import pallas as pl
from jax.experimental.pallas import tpu as pltpu


# ---------------------------------------------------------------------------
# Small helpers
# ---------------------------------------------------------------------------
def _round_up(n, m):
    return ((n + m - 1) // m) * m


def _row_tiles(n, max_tile=512):
    """Row count padded to a tile multiple, and the tile size."""
    n8 = _round_up(n, 8)
    tile = min(max_tile, n8)
    return _round_up(n8, tile), tile


def _pad_rows(x, n_pad):
    n = x.shape[0]
    if n_pad == n:
        return x
    pads = ((0, n_pad - n),) + ((0, 0),) * (x.ndim - 1)
    return jnp.pad(x, pads)


# ---------------------------------------------------------------------------
# Kernel 1: fused encoder
#   conv1(k=1)+ReLU  ->  [mean | logvar] (one (H, 2L) matmul)  ->  reparam.
# Row-tiled over packed rows, parallel grid semantics.
# ---------------------------------------------------------------------------
def _encoder_kernel(x_ref, w1_ref, b1_ref, w2_ref, b2_ref, eps_ref,
                    mean_ref, logvar_ref, z_ref, *, latent):
    x = x_ref[...].astype(jnp.bfloat16)
    xe = jnp.dot(x, w1_ref[...], preferred_element_type=jnp.float32) + b1_ref[...]
    xe = jnp.maximum(xe, 0.0)                                    # Conv1d(k=1)+ReLU
    ml = jnp.dot(xe.astype(jnp.bfloat16), w2_ref[...],
                 preferred_element_type=jnp.float32) + b2_ref[...]
    mean = ml[:, :latent]
    logvar = ml[:, latent:]
    mean_ref[...] = mean
    logvar_ref[...] = logvar
    z_ref[...] = eps_ref[...] * jnp.exp(0.5 * logvar) + mean


def encoder_forward(x, w1_t, b1, w2_t, b2, eps, latent):
    n, e = x.shape
    h = w1_t.shape[1]
    n_pad, tile = _row_tiles(n)
    x_p = _pad_rows(x, n_pad)
    eps_p = _pad_rows(eps, n_pad)
    out_shape = tuple(jax.ShapeDtypeStruct((n_pad, latent), jnp.float32)
                      for _ in range(3))
    mean, logvar, z = pl.pallas_call(
        functools.partial(_encoder_kernel, latent=latent),
        out_shape=out_shape,
        grid=(n_pad // tile,),
        in_specs=[pl.BlockSpec((tile, e), lambda i: (i, 0)),
                  pl.BlockSpec((e, h), lambda i: (0, 0)),
                  pl.BlockSpec((1, h), lambda i: (0, 0)),
                  pl.BlockSpec((h, 2 * latent), lambda i: (0, 0)),
                  pl.BlockSpec((1, 2 * latent), lambda i: (0, 0)),
                  pl.BlockSpec((tile, latent), lambda i: (i, 0))],
        out_specs=tuple(pl.BlockSpec((tile, latent), lambda i: (i, 0))
                        for _ in range(3)),
        compiler_params=pltpu.CompilerParams(
            dimension_semantics=("parallel",)),
    )(x_p, w1_t, b1, w2_t, b2, eps_p)
    return mean[:n], logvar[:n], z[:n]


# ---------------------------------------------------------------------------
# Kernel 2: row-tiled linear (x @ W + b), bf16 MXU feed, f32 accumulation.
# Used for the hoisted GRU input projection (E -> 3H).
# ---------------------------------------------------------------------------
def _linear_kernel(x_ref, w_ref, b_ref, o_ref):
    y = jnp.dot(x_ref[...].astype(jnp.bfloat16), w_ref[...],
                preferred_element_type=jnp.float32) + b_ref[...]
    o_ref[...] = y.astype(o_ref.dtype)


def linear(x, w_t, b_row):
    n, k = x.shape
    m = w_t.shape[1]
    n_pad, tile = _row_tiles(n)
    x_p = _pad_rows(x, n_pad)
    out = pl.pallas_call(
        _linear_kernel,
        out_shape=jax.ShapeDtypeStruct((n_pad, m), jnp.float32),
        grid=(n_pad // tile,),
        in_specs=[pl.BlockSpec((tile, k), lambda i: (i, 0)),
                  pl.BlockSpec((k, m), lambda i: (0, 0)),
                  pl.BlockSpec((1, m), lambda i: (0, 0))],
        out_specs=pl.BlockSpec((tile, m), lambda i: (i, 0)),
        compiler_params=pltpu.CompilerParams(
            dimension_semantics=("parallel",)),
    )(x_p, w_t, b_row)
    return out[:n]


# ---------------------------------------------------------------------------
# Kernel 3: GRU recurrence, time-chunked grid, h carried in VMEM scratch.
# gi (precomputed x @ W_ih + b_ih) per step; one (B,H)x(H,3H) dot per step.
# Padded-time outputs masked to 0 via lengths (pack/pad_packed equivalence).
# ---------------------------------------------------------------------------
def _gru_kernel(gi_ref, len_ref, whh_ref, bhh_ref, o_ref, h_ref, *, hidden, tc):
    c = pl.program_id(0)

    @pl.when(c == 0)
    def _():
        h_ref[...] = jnp.zeros_like(h_ref)

    lengths = len_ref[...]           # (B, 1) int32
    whh = whh_ref[...]               # (H, 3H) f32
    bhh = bhh_ref[...]               # (1, 3H) f32

    @pl.loop(0, tc, unroll=True)
    def _(t):
        h = h_ref[...]               # (B, H)
        gi_t = gi_ref[t]             # (B, 3H) = [r | z | n] input gates (+ b_ih)
        gh = jnp.dot(h, whh, preferred_element_type=jnp.float32) + bhh
        r = jax.nn.sigmoid(gi_t[:, :hidden] + gh[:, :hidden])
        zg = jax.nn.sigmoid(gi_t[:, hidden:2 * hidden] + gh[:, hidden:2 * hidden])
        n = jnp.tanh(gi_t[:, 2 * hidden:] + r * gh[:, 2 * hidden:])
        h_new = (1.0 - zg) * n + zg * h
        h_ref[...] = h_new
        t_global = c * tc + t
        mask = (lengths > t_global).astype(jnp.float32)   # (B, 1)
        o_ref[t] = (h_new * mask).astype(o_ref.dtype)


def gru_forward(gi_seq, lengths_col, w_hh_t, b_hh_row, *, tc):
    s_pad, b, three_h = gi_seq.shape
    h = three_h // 3
    return pl.pallas_call(
        functools.partial(_gru_kernel, hidden=h, tc=tc),
        out_shape=jax.ShapeDtypeStruct((s_pad, b, h), jnp.float32),
        grid=(s_pad // tc,),
        in_specs=[pl.BlockSpec((tc, b, three_h), lambda i: (i, 0, 0)),
                  pl.BlockSpec((b, 1), lambda i: (0, 0)),
                  pl.BlockSpec((h, three_h), lambda i: (0, 0)),
                  pl.BlockSpec((1, three_h), lambda i: (0, 0))],
        out_specs=pl.BlockSpec((tc, b, h), lambda i: (i, 0, 0)),
        scratch_shapes=[pltpu.VMEM((b, h), jnp.float32)],
        compiler_params=pltpu.CompilerParams(
            dimension_semantics=("arbitrary",)),
    )(gi_seq, lengths_col, w_hh_t, b_hh_row)


# ---------------------------------------------------------------------------
# Kernel 4: outputs2vocab projection fused with log_softmax, row-tiled.
# TODO(synk): for large vocab (V ~ 32-50k) on v7x (64 MiB VMEM), add a vocab
#             grid axis with an online-LSE two-pass reduction; here V fits.
# ---------------------------------------------------------------------------
def _proj_logsoftmax_kernel(x_ref, w_ref, b_ref, o_ref):
    logits = jnp.dot(x_ref[...].astype(jnp.bfloat16), w_ref[...],
                     preferred_element_type=jnp.float32) + b_ref[...]
    m = jnp.max(logits, axis=-1, keepdims=True)
    shifted = logits - m
    lse = jnp.log(jnp.sum(jnp.exp(shifted), axis=-1, keepdims=True))
    o_ref[...] = (shifted - lse).astype(o_ref.dtype)


def project_log_softmax(x, w_t, b_row):
    n, k = x.shape
    v = w_t.shape[1]
    n_pad, tile = _row_tiles(n, max_tile=256)
    x_p = _pad_rows(x, n_pad)
    out = pl.pallas_call(
        _proj_logsoftmax_kernel,
        out_shape=jax.ShapeDtypeStruct((n_pad, v), jnp.float32),
        grid=(n_pad // tile,),
        in_specs=[pl.BlockSpec((tile, k), lambda i: (i, 0)),
                  pl.BlockSpec((k, v), lambda i: (0, 0)),
                  pl.BlockSpec((1, v), lambda i: (0, 0))],
        out_specs=pl.BlockSpec((tile, v), lambda i: (i, 0)),
        compiler_params=pltpu.CompilerParams(
            dimension_semantics=("parallel",)),
    )(x_p, w_t, b_row)
    return out[:n]


# ---------------------------------------------------------------------------
# Parameter init (deterministic, synthetic) and one-time weight preparation
# (transpose / concat / bf16 cast hoisted out of the per-call path).
# ---------------------------------------------------------------------------
def init_params(key, vocab, emb_dim, hidden, latent, pad_idx):
    ks = jax.random.split(key, 16)
    s = 0.1

    def rnd(i, shape):
        return jax.random.normal(ks[i], shape, dtype=jnp.float32) * s

    emb = rnd(0, (vocab, emb_dim)).at[pad_idx].set(0.0)   # padding_idx row = 0
    return dict(
        embedding=emb,
        conv1_w=rnd(1, (hidden, emb_dim)),        # Conv1d(E->H, k=1)
        conv1_b=rnd(2, (hidden,)),
        enc_mean_w=rnd(3, (latent, hidden)),
        enc_mean_b=rnd(4, (latent,)),
        enc_logvar_w=rnd(5, (latent, hidden)),
        enc_logvar_b=rnd(6, (latent,)),
        lat2hid_w=rnd(7, (hidden, latent)),       # present in module, dead in forward
        lat2hid_b=rnd(8, (hidden,)),
        gru_w_ih=rnd(9, (3 * hidden, emb_dim)),   # stacked [r; z; n]
        gru_w_hh=rnd(10, (3 * hidden, hidden)),
        gru_b_ih=rnd(11, (3 * hidden,)),
        gru_b_hh=rnd(12, (3 * hidden,)),
        out_w=rnd(13, (vocab, hidden)),
        out_b=rnd(14, (vocab,)),
    )


def prepare_weights(params):
    hidden = params["conv1_w"].shape[0]
    latent = params["enc_mean_w"].shape[0]
    enc2 = jnp.concatenate([params["enc_mean_w"], params["enc_logvar_w"]], axis=0)
    enc2_b = jnp.concatenate([params["enc_mean_b"], params["enc_logvar_b"]])
    return dict(
        embedding=params["embedding"],
        conv1_w_t=params["conv1_w"].T.astype(jnp.bfloat16),      # (E, H)
        conv1_b=params["conv1_b"].reshape(1, -1),
        enc2_w_t=enc2.T.astype(jnp.bfloat16),                    # (H, 2L) [mean|logvar]
        enc2_b=enc2_b.reshape(1, -1),
        w_ih_t=params["gru_w_ih"].T.astype(jnp.bfloat16),        # (E, 3H)
        b_ih=params["gru_b_ih"].reshape(1, -1),
        w_hh_t=params["gru_w_hh"].T,                             # (H, 3H), f32 (recurrent)
        b_hh=params["gru_b_hh"].reshape(1, -1),
        out_w_t=params["out_w"].T.astype(jnp.bfloat16),          # (H, V)
        out_b=params["out_b"].reshape(1, -1),
        hidden=int(hidden), latent=int(latent),
    )


# ---------------------------------------------------------------------------
# Forward pass (mirrors ConvVAE.forward for num_layers=1, bidirectional=False,
# word_dropout=0, embedding_dropout=0).
# ---------------------------------------------------------------------------
def conv_vae_forward(wp, tokens, lengths_np, eps_key, time_chunk=4):
    B, _ = tokens.shape
    latent = wp["latent"]
    hidden = wp["hidden"]

    # torch.sort(length, descending=True) — host side, lengths only (no device sync)
    sorted_idx = np.argsort(-lengths_np, kind="stable")
    sorted_lengths = lengths_np[sorted_idx]
    reversed_idx = np.argsort(sorted_idx)
    max_len = int(sorted_lengths[0])

    tokens_sorted = tokens[jnp.asarray(sorted_idx)]
    emb = wp["embedding"][tokens_sorted][:, :max_len, :]            # (B, S', E) gather (glue)

    # pack_padded_sequence(batch_first=True): time-major valid positions.
    valid = np.arange(max_len)[:, None] < sorted_lengths[None, :]   # (S', B)
    pack_t, pack_b = np.nonzero(valid)                              # time-major order
    packed = emb[jnp.asarray(pack_b), jnp.asarray(pack_t)]          # (T, E)
    T = int(pack_b.shape[0])

    # Fused encoder: conv1(k=1)+ReLU -> [mean|logvar] -> reparameterize.
    eps = jax.random.normal(eps_key, (T, latent), dtype=jnp.float32)
    mean, log_var, z = encoder_forward(packed, wp["conv1_w_t"], wp["conv1_b"],
                                       wp["enc2_w_t"], wp["enc2_b"], eps, latent)

    # latent2hidden(z) is computed but never consumed in the reference forward
    # (decoder starts from h0=0) -> dead compute dropped.

    # Decoder GRU: hoist input projections into one row-tiled GEMM over (S'*B).
    x_seq = jnp.transpose(emb, (1, 0, 2))                           # (S', B, E)
    gi_flat = linear(x_seq.reshape(max_len * B, -1), wp["w_ih_t"], wp["b_ih"])
    gi = gi_flat.reshape(max_len, B, 3 * hidden)

    s_pad = _round_up(max_len, time_chunk)
    gi = _pad_rows(gi, s_pad)
    lengths_col = jnp.asarray(sorted_lengths.astype(np.int32).reshape(B, 1))
    gru_out = gru_forward(gi, lengths_col, wp["w_hh_t"], wp["b_hh"],
                          tc=time_chunk)                            # (s_pad, B, H)

    padded_output = jnp.transpose(gru_out[:max_len], (1, 0, 2))     # (B, S', H)
    padded_output = padded_output[jnp.asarray(reversed_idx)]        # unsort

    flat = padded_output.reshape(B * max_len, hidden)
    logp_flat = project_log_softmax(flat, wp["out_w_t"], wp["out_b"])
    logp = logp_flat.reshape(B, max_len, -1)
    return logp, mean, log_var, z


if __name__ == "__main__":
    vocab_size = 32
    embedding_size = 16
    hidden_size = 32
    latent_size = 8
    pad_idx, sos_idx, eos_idx, unk_idx = 0, 1, 2, 3
    B, S = 2, 8

    key = jax.random.PRNGKey(0)
    pkey, tkey, ekey = jax.random.split(key, 3)

    params = init_params(pkey, vocab_size, embedding_size, hidden_size,
                         latent_size, pad_idx)
    wp = prepare_weights(params)

    tokens = jax.random.randint(tkey, (B, S), 4, vocab_size, dtype=jnp.int32)
    lengths = np.array([5, 8], dtype=np.int32)
    tok_np = np.array(tokens)
    for b in range(B):
        tok_np[b, lengths[b]:] = pad_idx
    tokens = jnp.asarray(tok_np)

    logp, mean, log_var, z = conv_vae_forward(wp, tokens, lengths, ekey,
                                              time_chunk=4)
    jax.block_until_ready((logp, mean, log_var, z))

    T = int(lengths.sum())
    assert logp.shape == (B, int(lengths.max()), vocab_size)
    assert mean.shape == (T, latent_size)
    assert log_var.shape == (T, latent_size)
    assert z.shape == (T, latent_size)
    print("KERNEL_OK")
</pallas_src>

<mosaic_0001>
module attributes {stable_mosaic.version = 11 : i64} {
  func.func @_encoder_kernel(%arg0: i32, %arg1: memref<16x16xf32, #tpu.memory_space<vmem>>, %arg2: memref<16x32xbf16, #tpu.memory_space<vmem>>, %arg3: memref<1x32xf32, #tpu.memory_space<vmem>>, %arg4: memref<32x16xbf16, #tpu.memory_space<vmem>>, %arg5: memref<1x16xf32, #tpu.memory_space<vmem>>, %arg6: memref<16x8xf32, #tpu.memory_space<vmem>>, %arg7: memref<16x8xf32, #tpu.memory_space<vmem>>, %arg8: memref<16x8xf32, #tpu.memory_space<vmem>>, %arg9: memref<16x8xf32, #tpu.memory_space<vmem>>) attributes {dimension_semantics = [#tpu.dimension_semantics<parallel>], iteration_bounds = array<i64: 1>, scalar_prefetch = 0 : i64, scratch_operands = 0 : i64, tpu.core_type = #tpu.core_type<tc>, window_params = [{transform_indices = @transform_0, window_bounds = array<i64: 16, 16>}, {pipeline_mode = #tpu.pipeline_mode<synchronous>, transform_indices = @transform_1, window_bounds = array<i64: 16, 32>}, {pipeline_mode = #tpu.pipeline_mode<synchronous>, transform_indices = @transform_2, window_bounds = array<i64: 1, 32>}, {pipeline_mode = #tpu.pipeline_mode<synchronous>, transform_indices = @transform_3, window_bounds = array<i64: 32, 16>}, {pipeline_mode = #tpu.pipeline_mode<synchronous>, transform_indices = @transform_4, window_bounds = array<i64: 1, 16>}, {transform_indices = @transform_5, window_bounds = array<i64: 16, 8>}, {transform_indices = @transform_6, window_bounds = array<i64: 16, 8>}, {transform_indices = @transform_7, window_bounds = array<i64: 16, 8>}, {transform_indices = @transform_8, window_bounds = array<i64: 16, 8>}]} {
    %c0 = arith.constant 0 : index
    %c0_0 = arith.constant 0 : index
    %0 = vector.load %arg1[%c0, %c0_0] : memref<16x16xf32, #tpu.memory_space<vmem>>, vector<16x16xf32>
    %1 = arith.truncf %0 : vector<16x16xf32> to vector<16x16xbf16>
    %c0_1 = arith.constant 0 : index
    %c0_2 = arith.constant 0 : index
    %2 = vector.load %arg2[%c0_1, %c0_2] : memref<16x32xbf16, #tpu.memory_space<vmem>>, vector<16x32xbf16>
    %cst = arith.constant dense<0.000000e+00> : vector<16x32xf32>
    %3 = tpu.matmul %1, %2, %cst {dimension_numbers = #tpu.dot_dimension_numbers<[1], [0], [0], [1], [0, 0, 1, 1], [], []>} : vector<16x16xbf16>, vector<16x32xbf16>, vector<16x32xf32> -> vector<16x32xf32>
    %c0_3 = arith.constant 0 : index
    %c0_4 = arith.constant 0 : index
    %4 = vector.load %arg3[%c0_3, %c0_4] : memref<1x32xf32, #tpu.memory_space<vmem>>, vector<1x32xf32>
    %5 = vector.broadcast %4 : vector<1x32xf32> to vector<16x32xf32>
    %6 = arith.addf %3, %5 : vector<16x32xf32>
    %cst_5 = arith.constant 0.000000e+00 : f32
    %7 = vector.broadcast %cst_5 : f32 to vector<16x32xf32>
    %8 = arith.maximumf %6, %7 : vector<16x32xf32>
    %9 = arith.truncf %8 : vector<16x32xf32> to vector<16x32xbf16>
    %c0_6 = arith.constant 0 : index
    %c0_7 = arith.constant 0 : index
    %10 = vector.load %arg4[%c0_6, %c0_7] : memref<32x16xbf16, #tpu.memory_space<vmem>>, vector<32x16xbf16>
    %cst_8 = arith.constant dense<0.000000e+00> : vector<16x16xf32>
    %11 = tpu.matmul %9, %10, %cst_8 {dimension_numbers = #tpu.dot_dimension_numbers<[1], [0], [0], [1], [0, 0, 1, 1], [], []>} : vector<16x32xbf16>, vector<32x16xbf16>, vector<16x16xf32> -> vector<16x16xf32>
    %c0_9 = arith.constant 0 : index
    %c0_10 = arith.constant 0 : index
    %12 = vector.load %arg5[%c0_9, %c0_10] : memref<1x16xf32, #tpu.memory_space<vmem>>, vector<1x16xf32>
    %13 = vector.broadcast %12 : vector<1x16xf32> to vector<16x16xf32>
    %14 = arith.addf %11, %13 : vector<16x16xf32>
    %15 = vector.extract_strided_slice %14 {offsets = [0, 0], sizes = [16, 8], strides = [1, 1]} : vector<16x16xf32> to vector<16x8xf32>
    %16 = vector.extract_strided_slice %14 {offsets = [0, 8], sizes = [16, 8], strides = [1, 1]} : vector<16x16xf32> to vector<16x8xf32>
    %c0_11 = arith.constant 0 : index
    %c0_12 = arith.constant 0 : index
    %17 = vector.load %arg7[%c0_11, %c0_12] : memref<16x8xf32, #tpu.memory_space<vmem>>, vector<16x8xf32>
    tpu.vector_store %arg7[%c0_11, %c0_12], %15 {strides = array<i32>} : memref<16x8xf32, #tpu.memory_space<vmem>>, vector<16x8xf32>,
    %c0_13 = arith.constant 0 : index
    %c0_14 = arith.constant 0 : index
    %18 = vector.load %arg8[%c0_13, %c0_14] : memref<16x8xf32, #tpu.memory_space<vmem>>, vector<16x8xf32>
    tpu.vector_store %arg8[%c0_13, %c0_14], %16 {strides = array<i32>} : memref<16x8xf32, #tpu.memory_space<vmem>>, vector<16x8xf32>,
    %c0_15 = arith.constant 0 : index
    %c0_16 = arith.constant 0 : index
    %19 = vector.load %arg6[%c0_15, %c0_16] : memref<16x8xf32, #tpu.memory_space<vmem>>, vector<16x8xf32>
    %cst_17 = arith.constant 5.000000e-01 : f32
    %20 = vector.broadcast %cst_17 : f32 to vector<16x8xf32>
    %21 = arith.mulf %20, %16 : vector<16x8xf32>
    %22 = math.exp %21 : vector<16x8xf32>
    %23 = arith.mulf %19, %22 : vector<16x8xf32>
    %24 = arith.addf %23, %15 : vector<16x8xf32>
    %c0_18 = arith.constant 0 : index
    %c0_19 = arith.constant 0 : index
    %25 = vector.load %arg9[%c0_18, %c0_19] : memref<16x8xf32, #tpu.memory_space<vmem>>, vector<16x8xf32>
    tpu.vector_store %arg9[%c0_18, %c0_19], %24 {strides = array<i32>} : memref<16x8xf32, #tpu.memory_space<vmem>>, vector<16x8xf32>,
    return
  }
  func.func @transform_0(%arg0: i32) -> (i32, i32) {
    %c0_i32 = arith.constant 0 : i32
    %c0_i32_0 = arith.constant 0 : i32
    return %arg0, %c0_i32 : i32, i32
  }
  func.func @transform_1(%arg0: i32) -> (i32, i32) {
    %c0_i32 = arith.constant 0 : i32
    %c0_i32_0 = arith.constant 0 : i32
    %c0_i32_1 = arith.constant 0 : i32
    return %c0_i32, %c0_i32_0 : i32, i32
  }
  func.func @transform_2(%arg0: i32) -> (i32, i32) {
    %c0_i32 = arith.constant 0 : i32
    %c0_i32_0 = arith.constant 0 : i32
    %c0_i32_1 = arith.constant 0 : i32
    return %c0_i32, %c0_i32_0 : i32, i32
  }
  func.func @transform_3(%arg0: i32) -> (i32, i32) {
    %c0_i32 = arith.constant 0 : i32
    %c0_i32_0 = arith.constant 0 : i32
    %c0_i32_1 = arith.constant 0 : i32
    return %c0_i32, %c0_i32_0 : i32, i32
  }
  func.func @transform_4(%arg0: i32) -> (i32, i32) {
    %c0_i32 = arith.constant 0 : i32
    %c0_i32_0 = arith.constant 0 : i32
    %c0_i32_1 = arith.constant 0 : i32
    return %c0_i32, %c0_i32_0 : i32, i32
  }
  func.func @transform_5(%arg0: i32) -> (i32, i32) {
    %c0_i32 = arith.constant 0 : i32
    %c0_i32_0 = arith.constant 0 : i32
    return %arg0, %c0_i32 : i32, i32
  }
  func.func @transform_6(%arg0: i32) -> (i32, i32) {
    %c0_i32 = arith.constant 0 : i32
    %c0_i32_0 = arith.constant 0 : i32
    return %arg0, %c0_i32 : i32, i32
  }
  func.func @transform_7(%arg0: i32) -> (i32, i32) {
    %c0_i32 = arith.constant 0 : i32
    %c0_i32_0 = arith.constant 0 : i32
    return %arg0, %c0_i32 : i32, i32
  }
  func.func @transform_8(%arg0: i32) -> (i32, i32) {
    %c0_i32 = arith.constant 0 : i32
    %c0_i32_0 = arith.constant 0 : i32
    return %arg0, %c0_i32 : i32, i32
  }
}

</mosaic_0001>

<bundles_post_ra>
// kernel: tpu_custom_call.1
= control target key start
LH: loop header
LB: loop body
LE: loop exit
PB: predicated region body
PF: predicated region fallthrough
CT: control target
= control target key end

     0   :  { %v244_v0 = vmov 0.0   ;;  %vm245_vm0 = vmmov 0   ;;  %vm45_vm1 = vcmask 130048   ;;  %vm116_vm2 = vcmask 261120   ;;  %s246_s17 = smov 120   ;;  %s343_s1 = inlined_call_operand.vmem [shape: bf16[16,32], index: 1, kind: input, shape index: {}]   ;;  %s344_s0 = inlined_call_operand.vmem [shape: f32[16,16], index: 0, kind: input, shape index: {}]   ;;  %s345_s3 = inlined_call_operand.vmem [shape: bf16[32,16], index: 3, kind: input, shape index: {}]   ;;  %s346_s2 = inlined_call_operand.vmem [shape: f32[1,32], index: 2, kind: input, shape index: {}]   ;;  %s347_s4 = inlined_call_operand.vmem [shape: f32[1,16], index: 4, kind: input, shape index: {}]   ;;  %s348_s6 = inlined_call_operand.vmem [shape: f32[16,8], index: 6, kind: output, shape index: {0}]   ;;  %s349_s7 = inlined_call_operand.vmem [shape: f32[16,8], index: 7, kind: output, shape index: {1}]   ;;  %s350_s5 = inlined_call_operand.vmem [shape: f32[16,8], index: 5, kind: input, shape index: {}]   ;;  %s351_s8 = inlined_call_operand.vmem [shape: f32[16,8], index: 8, kind: output, shape index: {2}]  }
   0x1   :  { %220 = vmatprep.subr.bf16.mxu0 %v244_v0  ;;  %v237_v1 = vld [vmem:[%s343_s1] sm:$0xff]   ;;  %222 = vmatprep.mubr.msk.bf16.mxu0 %vm245_vm0, %v244_v0  ;;  %v28_v3 = vld [vmem:[%s344_s0 + $0x8] sm:$0xff]  ;;  %vm161_vm3 = vcmask 64512  }
   0x2   :  { %v27_v2 = vld [vmem:[%s344_s0] sm:$0xff]  ;;  %226 = vmatprep.subr.bf16.mxu1 %v244_v0  ;;  %230 = vmatprep.mubr.msk.bf16.mxu1 %vm245_vm0, %v244_v0  ;;  %v239_v6 = vld [vmem:[%s345_s3 + $0x8] sm:$0xff]  }
   0x3   :  { %221 = vmatpush3.bf16.msra.mxu0 %v237_v1  ;;  %v29_v4 = vpack.c.bf16 %v28_v3, %v27_v2  ;;  %v238_v5 = vld [vmem:[%s345_s3] sm:$0xff]   ;;  %v175_v35 = vld [vmem:[%s350_s5 + $0x8] sm:$0xff] }
   0x4   :  { %227 = vmatpush3.bf16.msra.mxu1 %v238_v5  ;;  %v208_v7 = vld [vmem:[%s346_s2] ss:$0 sm:$0xff] }
   0x5   :  { %228 = vmatprep.subr.bf16.mxu1 %v244_v0  ;;  %v211_v17 = vld [vmem:[%s347_s4] ss:$0 sm:$0xff] }
   0x6   :  { %223 = vmatmul.mubr.msk.bf16.vlgmr.msra.gmra.mrb[0].mxu0 %vm45_vm1, %v29_v4  ;;  %v174_v32 = vld [vmem:[%s350_s5] sm:$0xff] }
   0x8   :  { %229 = vmatpush3.bf16.msra.mxu1 %v239_v6 }
  0xd9   :  { %v83_v8 = vpop.f32.mrb[0].mxu0 }
  0xda   :  { %v84_v9 = vadd.f32 %v208_v7, %v83_v8  ;;  %v224_v10 = vpop.f32.mrb[1].mxu0 }
  0xdb   :  { %v86_v11 = vpop.f32.mrb[2].mxu0 }
  0xdc   :  { %v87_v12 = vadd.f32 %v208_v7, %v86_v11  ;;  %v225_v13 = vpop.f32.mrb[3].mxu0  ;;  %v90_v14 = vmax.f32 %v84_v9, 0.0 }
  0xde   :  { %v91_v15 = vmax.f32 %v87_v12, 0.0 }
  0xe0   :  { %v92_v16 = vpack.c.bf16 %v91_v15, %v90_v14 }
  0xe2   :  { %231 = vmatmul.mubr.msk.bf16.vlgmr.msra.gmra.mrb[0].mxu1 %vm116_vm2, %v92_v16 }
 0x1b5   :  { %v154_v18 = vpop.f32.mrb[0].mxu1 }
 0x1b6   :  { %v155_v19 = vadd.f32 %v211_v17, %v154_v18  ;;  %v232_v20 = vpop.f32.mrb[1].mxu1 }
 0x1b7   :  { %v157_v21 = vpop.f32.mrb[2].mxu1 }
 0x1b8   :  { %162 = vst.msk [vmem:[%s348_s6] sm:$0xff] %vm161_vm3, %v155_v19  ;;  %v176_v22 = vmul.f32 0.5, %v155_v19  ;;  %v158_v23 = vadd.f32 %v211_v17, %v157_v21  ;;  %166 = vrot.lane.b32.xlu1 %v155_v19, %s246_s17  ;;  %v233_v24 = vpop.f32.mrb[3].mxu1 }
 0x1ba   :  { %v178_v25 = vmul.f32 1.442695, %v176_v22  ;;  %163 = vst.msk [vmem:[%s348_s6 + $0x8] sm:$0xff] %vm161_vm3, %v158_v23  ;;  %v177_v26 = vmul.f32 0.5, %v158_v23 }
 0x1bc   :  { %240 = vpow2.f32 %v178_v25  ;;  %v180_v27 = vmul.f32 1.442695, %v177_v26  ;;  %168 = vrot.lane.b32.xlu1 %v158_v23, %s246_s17 }
 0x1be   :  { %242 = vpow2.f32 %v180_v27 }
 0x1c6   :  { %v241_v28 = vpop.eup %240 }
 0x1c7   :  { %184 = vrot.lane.b32.xlu0 %v241_v28, %s246_s17 }
 0x1c8   :  { %v243_v29 = vpop.eup %242 }
 0x1cb   :  { %186 = vrot.lane.b32.xlu0 %v243_v29, %s246_s17 }
 0x22a   :  { %v167_v30 = vpop.permute.xlu1 %166 }
 0x22b   :  { %172 = vst.msk [vmem:[%s349_s7] sm:$0xff] %vm161_vm3, %v167_v30 }
 0x22e   :  { %v169_v31 = vpop.permute.xlu1 %168 }
 0x22f   :  { %173 = vst.msk [vmem:[%s349_s7 + $0x8] sm:$0xff] %vm161_vm3, %v169_v31 }
 0x239   :  { %v185_v33 = vpop.permute.xlu0 %184 }
 0x23a   :  { %v190_v34 = vmul.f32 %v185_v33, %v174_v32 }
 0x23c   :  { %v192_v36 = vadd.f32 %v190_v34, %v155_v19 }
 0x23d   :  { %v187_v37 = vpop.permute.xlu0 %186 }
 0x23e   :  { %194 = vst.msk [vmem:[%s351_s8] sm:$0xff] %vm161_vm3, %v192_v36  ;;  %v191_v38 = vmul.f32 %v187_v37, %v175_v35 }
 0x240   :  { %v193_v39 = vadd.f32 %v191_v38, %v158_v23 }
 0x242   :  { %195 = vst.msk [vmem:[%s351_s8 + $0x8] sm:$0xff] %vm161_vm3, %v193_v39 }

</bundles_post_ra>
